<compile_context>
chip_gen: v7x
topology: tpu7x:2x2x1
jax: 0.10.0
libtpu: 0.0.40
codegen_flags: <defaults>
</compile_context>

<pallas_src>
import functools

import jax
import jax.numpy as jnp
from jax.experimental import pallas as pl
from jax.experimental.pallas import tpu as pltpu


# ----------------------------------------------------------------------------- parameters

def _slab_cols(C):
    """Column offsets of the packed (C, 640) parameter slab (MXU tiles 128-lane aligned)."""
    assert 4 * C <= 128, "each weight tile must fit a 128-lane aligned slot"
    cols = {
        "W1": 0,      # conv1 weight   (Cout, Cin)          -> C cols  @ lane 0
        "W2": 128,    # conv2 weight   (Cout, 4C) [u,r,d,l] -> 4C cols @ lane 128
        "W3": 256,    # conv3 weight   (Cout, 4C) [u,r,d,l] -> 4C cols @ lane 256
        "WOUT": 384,  # conv_out weight as a ROW (row 0, C lanes)      @ lane 384
        "B1": 512,    # conv1 bias (C,) -> 1 col
        "B2": 513,    # conv2 bias
        "B3": 514,    # conv3 bias
        "R1": 515,    # irnn1: [wu, wr, wd, wl, bu, br, bd, bl] -> 8 cols
        "R2": 523,    # irnn2: same layout                      -> 8 cols
    }
    return cols, 640


def pack_params(p, C):
    """Pack all SAM weights into a single (C, 640) f32 slab (one resident DMA channel)."""
    cols, ncols = _slab_cols(C)
    slab = jnp.zeros((C, ncols), jnp.float32)
    slab = slab.at[:, cols["W1"]:cols["W1"] + C].set(p["conv1_w"])
    slab = slab.at[:, cols["W2"]:cols["W2"] + 4 * C].set(p["conv2_w"])
    slab = slab.at[:, cols["W3"]:cols["W3"] + 4 * C].set(p["conv3_w"])
    slab = slab.at[0, cols["WOUT"]:cols["WOUT"] + C].set(p["conv_out_w"])
    slab = slab.at[:, cols["B1"]].set(p["conv1_b"])
    slab = slab.at[:, cols["B2"]].set(p["conv2_b"])
    slab = slab.at[:, cols["B3"]].set(p["conv3_b"])
    slab = slab.at[:, cols["R1"]:cols["R1"] + 8].set(
        jnp.stack([p["irnn1_wu"], p["irnn1_wr"], p["irnn1_wd"], p["irnn1_wl"],
                   p["irnn1_bu"], p["irnn1_br"], p["irnn1_bd"], p["irnn1_bl"]], axis=1))
    slab = slab.at[:, cols["R2"]:cols["R2"] + 8].set(
        jnp.stack([p["irnn2_wu"], p["irnn2_wr"], p["irnn2_wd"], p["irnn2_wl"],
                   p["irnn2_bu"], p["irnn2_br"], p["irnn2_bd"], p["irnn2_bl"]], axis=1))
    return slab, cols


def make_boundary_masks(H, W):
    """(8, H*W) f32 bitmap: rows [first_col, last_col, first_row, last_row, 0, 0, 0, 0].

    Precomputed on the host so the kernel needs no per-lane integer //,% (VALU relief)."""
    col = jnp.tile(jnp.arange(W, dtype=jnp.int32), H)
    row = jnp.repeat(jnp.arange(H, dtype=jnp.int32), W)
    rows = jnp.stack([
        (col == 0).astype(jnp.float32),
        (col == W - 1).astype(jnp.float32),
        (row == 0).astype(jnp.float32),
        (row == H - 1).astype(jnp.float32),
    ], axis=0)
    return jnp.concatenate([rows, jnp.zeros((4, H * W), jnp.float32)], axis=0)


def init_params(key, C):
    """Deterministic synthetic parameters for SAM(in_channels=C, out_channels=C).

    conv weights stored as (Cout, Cin) (PyTorch (Cout, Cin, 1, 1) squeezed); depthwise
    irnn convs are per-channel scale + bias vectors of shape (C,)."""
    ks = jax.random.split(key, 24)
    s = 0.2
    n = lambda k, shp: s * jax.random.normal(k, shp, jnp.float32)
    p = {
        "conv1_w": n(ks[0], (C, C)), "conv1_b": n(ks[1], (C,)),
        "irnn1_wu": n(ks[2], (C,)), "irnn1_wr": n(ks[3], (C,)),
        "irnn1_wd": n(ks[4], (C,)), "irnn1_wl": n(ks[5], (C,)),
        "irnn1_bu": n(ks[6], (C,)), "irnn1_br": n(ks[7], (C,)),
        "irnn1_bd": n(ks[8], (C,)), "irnn1_bl": n(ks[9], (C,)),
        "conv2_w": n(ks[10], (C, 4 * C)), "conv2_b": n(ks[11], (C,)),
        "irnn2_wu": n(ks[12], (C,)), "irnn2_wr": n(ks[13], (C,)),
        "irnn2_wd": n(ks[14], (C,)), "irnn2_wl": n(ks[15], (C,)),
        "irnn2_bu": n(ks[16], (C,)), "irnn2_br": n(ks[17], (C,)),
        "irnn2_bd": n(ks[18], (C,)), "irnn2_bl": n(ks[19], (C,)),
        "conv3_w": n(ks[20], (C, 4 * C)), "conv3_b": n(ks[21], (C,)),
        "conv_out_w": n(ks[22], (C,)),
    }
    return p


# ----------------------------------------------------------------------------- kernel

def sam_kernel(x_ref, m_ref, p_ref, o_ref, *, W, C, cols):
    S = x_ref.shape[-1]                       # lanes = H*W of one image
    v = x_ref[0]                              # (C, S) f32

    def bmask(r):                             # bitmap row -> (C, S) bool (f32 sublane bcast)
        return jnp.broadcast_to(m_ref[r:r + 1, :], (C, S)) > 0.5

    first_col, last_col, first_row, last_row = bmask(0), bmask(1), bmask(2), bmask(3)

    def col_vec(c):                           # (C, 1) per-channel scalar, broadcasts on lanes
        return p_ref[:, c:c + 1]

    def irnn(u, r_base):
        wu, wr, wd, wl = (col_vec(r_base + k) for k in range(4))
        bu, br, bd, bl = (col_vec(r_base + 4 + k) for k in range(4))
        relu = lambda t: jnp.maximum(t, 0.0)
        # pltpu.roll == jnp.roll semantics: result[p] = u[p - shift].  With per-image blocks
        # (S == H*W) any wrapped lane is a masked boundary lane, so wrap never leaks.
        tl = jnp.where(first_col, u, relu(wl * pltpu.roll(u, 1, 1) + bl + u))
        tr = jnp.where(last_col, u, relu(wr * pltpu.roll(u, S - 1, 1) + br + u))
        tu = jnp.where(first_row, u, relu(wu * pltpu.roll(u, W, 1) + bu + u))
        td = jnp.where(last_row, u, relu(wd * pltpu.roll(u, S - W, 1) + bd + u))
        return tu, tr, td, tl

    def conv_cat4(tu, tr, td, tl, w_col, b_col):
        # 1x1 conv over the [up, right, down, left] channel concat as ONE (C,4C)@(4C,S) MXU
        # dot against a 128-lane-aligned weight tile; the concat sits on sublane-tile
        # boundaries for f32 C=8 (a vreg relabel, not a copy).
        cat = jnp.concatenate([tu, tr, td, tl], axis=0)                       # (4C, S)
        acc = jnp.dot(p_ref[:, w_col:w_col + 4 * C], cat,
                      preferred_element_type=jnp.float32)
        return acc + col_vec(b_col)

    # conv1: 1x1, C -> C (bias)
    out = jnp.dot(p_ref[:, cols["W1"]:cols["W1"] + C], v,
                  preferred_element_type=jnp.float32) + col_vec(cols["B1"])
    # irnn1 + conv2
    out = conv_cat4(*irnn(out, cols["R1"]), cols["W2"], cols["B2"])
    # irnn2 + conv3 + relu
    out = jnp.maximum(conv_cat4(*irnn(out, cols["R2"]), cols["W3"], cols["B3"]), 0.0)
    # conv_out: C -> 1 (no bias) as a (1, C) @ (C, S) MXU dot, then exact sigmoid.
    z = jnp.dot(p_ref[0:1, cols["WOUT"]:cols["WOUT"] + C], out,
                preferred_element_type=jnp.float32)                          # (1, S)
    o_ref[0] = 1.0 / (1.0 + jnp.exp(-z))


# ----------------------------------------------------------------------------- wrapper

def sam_forward(x, params):
    """x: (N, C, H, W) float32 (PyTorch NCHW). Returns the mask, shape (N, 1, H, W)."""
    N, C, H, W = x.shape
    HW = H * W
    slab, cols = pack_params(params, C)
    bmask = make_boundary_masks(H, W)

    x3 = x.reshape(N, C, HW)                  # free view of NCHW: no host-side transpose

    # TODO(synk): for very large images (per-image f32 intermediates beyond the VMEM budget,
    # ~64 MiB on v7x / 128 MiB on v5e/v6e physical) split the lane axis into row groups
    # (multiples of W) and extend the boundary bitmap per block; not needed at these sizes.
    kernel = functools.partial(sam_kernel, W=W, C=C, cols=cols)
    out3 = pl.pallas_call(
        kernel,
        out_shape=jax.ShapeDtypeStruct((N, 1, HW), jnp.float32),
        grid_spec=pltpu.PrefetchScalarGridSpec(
            num_scalar_prefetch=0,
            grid=(N,),                                            # one image per grid step
            in_specs=[
                pl.BlockSpec((1, C, HW), lambda i: (i, 0, 0)),    # per-image activations
                pl.BlockSpec(bmask.shape, lambda i: (0, 0)),      # boundary bitmap (resident)
                pl.BlockSpec(slab.shape, lambda i: (0, 0)),       # packed params (resident)
            ],
            out_specs=pl.BlockSpec((1, 1, HW), lambda i: (i, 0, 0)),  # lane-dense output
        ),
        compiler_params=pltpu.CompilerParams(
            dimension_semantics=("parallel",)),                   # images split across TCs
    )(x3, bmask, slab)
    return out3.reshape(N, 1, H, W)


# ----------------------------------------------------------------------------- reference

def sam_reference(x, p):
    """Pure-JAX NCHW reference mirroring the PyTorch forward (explicit shifted slices)."""
    N, C, H, W = x.shape

    def vec(name):
        return p[name][:, None, None]

    def irnn_ref(u, tag):
        wu, wr, wd, wl = (vec(f"{tag}_w{d}") for d in "urdl")
        bu, br, bd, bl = (vec(f"{tag}_b{d}") for d in "urdl")
        relu = lambda t: jnp.maximum(t, 0.0)
        tl = jnp.concatenate(
            [u[:, :, :1], relu(wl * u[:, :, :W - 1] + bl + u[:, :, 1:])], axis=2)
        tr = jnp.concatenate(
            [relu(wr * u[:, :, 1:] + br + u[:, :, :W - 1]), u[:, :, W - 1:]], axis=2)
        tu = jnp.concatenate(
            [u[:, :1, :], relu(wu * u[:, :H - 1, :] + bu + u[:, 1:, :])], axis=1)
        td = jnp.concatenate(
            [relu(wd * u[:, 1:, :] + bd + u[:, :H - 1, :]), u[:, H - 1:, :]], axis=1)
        return tu, tr, td, tl

    def conv1x1(w, b, u):
        y = jnp.einsum("oi,ihw->ohw", w, u)
        return y + b[:, None, None]

    def per_image(xi):
        out = conv1x1(p["conv1_w"], p["conv1_b"], xi)
        tu, tr, td, tl = irnn_ref(out, "irnn1")
        out = conv1x1(p["conv2_w"], p["conv2_b"],
                      jnp.concatenate([tu, tr, td, tl], axis=0))
        tu, tr, td, tl = irnn_ref(out, "irnn2")
        out = jnp.maximum(conv1x1(p["conv3_w"], p["conv3_b"],
                                  jnp.concatenate([tu, tr, td, tl], axis=0)), 0.0)
        z = jnp.einsum("i,ihw->hw", p["conv_out_w"], out)
        return (1.0 / (1.0 + jnp.exp(-z)))[None]

    return jax.vmap(per_image)(x)


if __name__ == "__main__":
    key = jax.random.PRNGKey(0)
    kx, kp = jax.random.split(key)

    N, C, H, W = 2, 8, 16, 16       # forward() requires in_channels == out_channels
    x = jax.random.normal(kx, (N, C, H, W), jnp.float32)   # NCHW, like the PyTorch module
    params = init_params(kp, C)

    mask = jax.block_until_ready(sam_forward(x, params))
    ref = jax.block_until_ready(sam_reference(x, params))

    assert mask.shape == (N, 1, H, W)
    err = float(jnp.max(jnp.abs(mask - ref)))
    assert jnp.allclose(mask, ref, atol=2e-5, rtol=2e-5), f"max abs err {err}"
    print("KERNEL_OK")
</pallas_src>

<mosaic_0001>
module attributes {stable_mosaic.version = 11 : i64} {
  func.func @sam_kernel(%arg0: i32, %arg1: memref<1x8x256xf32, #tpu.memory_space<vmem>>, %arg2: memref<8x256xf32, #tpu.memory_space<vmem>>, %arg3: memref<8x640xf32, #tpu.memory_space<vmem>>, %arg4: memref<1x1x256xf32, #tpu.memory_space<vmem>>) attributes {dimension_semantics = [#tpu.dimension_semantics<parallel>], iteration_bounds = array<i64: 2>, scalar_prefetch = 0 : i64, scratch_operands = 0 : i64, tpu.core_type = #tpu.core_type<tc>, window_params = [{transform_indices = @transform_0, window_bounds = array<i64: 1, 8, 256>}, {pipeline_mode = #tpu.pipeline_mode<synchronous>, transform_indices = @transform_1, window_bounds = array<i64: 8, 256>}, {pipeline_mode = #tpu.pipeline_mode<synchronous>, transform_indices = @transform_2, window_bounds = array<i64: 8, 640>}, {transform_indices = @transform_3, window_bounds = array<i64: 1, 1, 256>}]} {
    %c0 = arith.constant 0 : index
    %c0_0 = arith.constant 0 : index
    %c0_1 = arith.constant 0 : index
    %0 = vector.load %arg1[%c0, %c0_0, %c0_1] : memref<1x8x256xf32, #tpu.memory_space<vmem>>, vector<1x8x256xf32>
    %1 = vector.shape_cast %0 : vector<1x8x256xf32> to vector<8x256xf32>
    %c0_2 = arith.constant 0 : index
    %c0_3 = arith.constant 0 : index
    %2 = vector.load %arg2[%c0_2, %c0_3] : memref<8x256xf32, #tpu.memory_space<vmem>>, vector<1x256xf32>
    %3 = vector.shape_cast %2 : vector<1x256xf32> to vector<1x256xf32>
    %4 = vector.broadcast %3 : vector<1x256xf32> to vector<8x256xf32>
    %cst = arith.constant 5.000000e-01 : f32
    %5 = vector.broadcast %cst : f32 to vector<8x256xf32>
    %6 = arith.cmpf ogt, %4, %5 : vector<8x256xf32>
    %c1 = arith.constant 1 : index
    %c0_4 = arith.constant 0 : index
    %7 = vector.load %arg2[%c1, %c0_4] : memref<8x256xf32, #tpu.memory_space<vmem>>, vector<1x256xf32>
    %8 = vector.shape_cast %7 : vector<1x256xf32> to vector<1x256xf32>
    %9 = vector.broadcast %8 : vector<1x256xf32> to vector<8x256xf32>
    %cst_5 = arith.constant 5.000000e-01 : f32
    %10 = vector.broadcast %cst_5 : f32 to vector<8x256xf32>
    %11 = arith.cmpf ogt, %9, %10 : vector<8x256xf32>
    %c2 = arith.constant 2 : index
    %c0_6 = arith.constant 0 : index
    %12 = vector.load %arg2[%c2, %c0_6] : memref<8x256xf32, #tpu.memory_space<vmem>>, vector<1x256xf32>
    %13 = vector.shape_cast %12 : vector<1x256xf32> to vector<1x256xf32>
    %14 = vector.broadcast %13 : vector<1x256xf32> to vector<8x256xf32>
    %cst_7 = arith.constant 5.000000e-01 : f32
    %15 = vector.broadcast %cst_7 : f32 to vector<8x256xf32>
    %16 = arith.cmpf ogt, %14, %15 : vector<8x256xf32>
    %c3 = arith.constant 3 : index
    %c0_8 = arith.constant 0 : index
    %17 = vector.load %arg2[%c3, %c0_8] : memref<8x256xf32, #tpu.memory_space<vmem>>, vector<1x256xf32>
    %18 = vector.shape_cast %17 : vector<1x256xf32> to vector<1x256xf32>
    %19 = vector.broadcast %18 : vector<1x256xf32> to vector<8x256xf32>
    %cst_9 = arith.constant 5.000000e-01 : f32
    %20 = vector.broadcast %cst_9 : f32 to vector<8x256xf32>
    %21 = arith.cmpf ogt, %19, %20 : vector<8x256xf32>
    %c0_10 = arith.constant 0 : index
    %c0_11 = arith.constant 0 : index
    %22 = vector.load %arg3[%c0_10, %c0_11] : memref<8x640xf32, #tpu.memory_space<vmem>>, vector<8x8xf32>
    %cst_12 = arith.constant dense<0.000000e+00> : vector<8x256xf32>
    %23 = tpu.matmul %22, %1, %cst_12 {dimension_numbers = #tpu.dot_dimension_numbers<[1], [0], [0], [1], [0, 0, 1, 1], [], []>} : vector<8x8xf32>, vector<8x256xf32>, vector<8x256xf32> -> vector<8x256xf32>
    %c0_13 = arith.constant 0 : index
    %c512 = arith.constant 512 : index
    %24 = vector.load %arg3[%c0_13, %c512] : memref<8x640xf32, #tpu.memory_space<vmem>>, vector<8x1xf32>
    %25 = vector.broadcast %24 : vector<8x1xf32> to vector<8x256xf32>
    %26 = arith.addf %23, %25 : vector<8x256xf32>
    %c0_14 = arith.constant 0 : index
    %c515 = arith.constant 515 : index
    %27 = vector.load %arg3[%c0_14, %c515] : memref<8x640xf32, #tpu.memory_space<vmem>>, vector<8x1xf32>
    %c0_15 = arith.constant 0 : index
    %c516 = arith.constant 516 : index
    %28 = vector.load %arg3[%c0_15, %c516] : memref<8x640xf32, #tpu.memory_space<vmem>>, vector<8x1xf32>
    %c0_16 = arith.constant 0 : index
    %c517 = arith.constant 517 : index
    %29 = vector.load %arg3[%c0_16, %c517] : memref<8x640xf32, #tpu.memory_space<vmem>>, vector<8x1xf32>
    %c0_17 = arith.constant 0 : index
    %c518 = arith.constant 518 : index
    %30 = vector.load %arg3[%c0_17, %c518] : memref<8x640xf32, #tpu.memory_space<vmem>>, vector<8x1xf32>
    %c0_18 = arith.constant 0 : index
    %c519 = arith.constant 519 : index
    %31 = vector.load %arg3[%c0_18, %c519] : memref<8x640xf32, #tpu.memory_space<vmem>>, vector<8x1xf32>
    %c0_19 = arith.constant 0 : index
    %c520 = arith.constant 520 : index
    %32 = vector.load %arg3[%c0_19, %c520] : memref<8x640xf32, #tpu.memory_space<vmem>>, vector<8x1xf32>
    %c0_20 = arith.constant 0 : index
    %c521 = arith.constant 521 : index
    %33 = vector.load %arg3[%c0_20, %c521] : memref<8x640xf32, #tpu.memory_space<vmem>>, vector<8x1xf32>
    %c0_21 = arith.constant 0 : index
    %c522 = arith.constant 522 : index
    %34 = vector.load %arg3[%c0_21, %c522] : memref<8x640xf32, #tpu.memory_space<vmem>>, vector<8x1xf32>
    %c1_i32 = arith.constant 1 : i32
    %35 = tpu.dynamic_rotate %26 by %c1_i32 dim 1 : vector<8x256xf32>, i32 -> vector<8x256xf32>
    %36 = vector.broadcast %30 : vector<8x1xf32> to vector<8x256xf32>
    %37 = arith.mulf %36, %35 : vector<8x256xf32>
    %38 = vector.broadcast %34 : vector<8x1xf32> to vector<8x256xf32>
    %39 = arith.addf %37, %38 : vector<8x256xf32>
    %40 = arith.addf %39, %26 : vector<8x256xf32>
    %cst_22 = arith.constant 0.000000e+00 : f32
    %41 = vector.broadcast %cst_22 : f32 to vector<8x256xf32>
    %42 = arith.maximumf %40, %41 : vector<8x256xf32>
    %43 = arith.select %6, %26, %42 : vector<8x256xi1>, vector<8x256xf32>
    %c255_i32 = arith.constant 255 : i32
    %44 = tpu.dynamic_rotate %26 by %c255_i32 dim 1 : vector<8x256xf32>, i32 -> vector<8x256xf32>
    %45 = vector.broadcast %28 : vector<8x1xf32> to vector<8x256xf32>
    %46 = arith.mulf %45, %44 : vector<8x256xf32>
    %47 = vector.broadcast %32 : vector<8x1xf32> to vector<8x256xf32>
    %48 = arith.addf %46, %47 : vector<8x256xf32>
    %49 = arith.addf %48, %26 : vector<8x256xf32>
    %cst_23 = arith.constant 0.000000e+00 : f32
    %50 = vector.broadcast %cst_23 : f32 to vector<8x256xf32>
    %51 = arith.maximumf %49, %50 : vector<8x256xf32>
    %52 = arith.select %11, %26, %51 : vector<8x256xi1>, vector<8x256xf32>
    %c16_i32 = arith.constant 16 : i32
    %53 = tpu.dynamic_rotate %26 by %c16_i32 dim 1 : vector<8x256xf32>, i32 -> vector<8x256xf32>
    %54 = vector.broadcast %27 : vector<8x1xf32> to vector<8x256xf32>
    %55 = arith.mulf %54, %53 : vector<8x256xf32>
    %56 = vector.broadcast %31 : vector<8x1xf32> to vector<8x256xf32>
    %57 = arith.addf %55, %56 : vector<8x256xf32>
    %58 = arith.addf %57, %26 : vector<8x256xf32>
    %cst_24 = arith.constant 0.000000e+00 : f32
    %59 = vector.broadcast %cst_24 : f32 to vector<8x256xf32>
    %60 = arith.maximumf %58, %59 : vector<8x256xf32>
    %61 = arith.select %16, %26, %60 : vector<8x256xi1>, vector<8x256xf32>
    %c240_i32 = arith.constant 240 : i32
    %62 = tpu.dynamic_rotate %26 by %c240_i32 dim 1 : vector<8x256xf32>, i32 -> vector<8x256xf32>
    %63 = vector.broadcast %29 : vector<8x1xf32> to vector<8x256xf32>
    %64 = arith.mulf %63, %62 : vector<8x256xf32>
    %65 = vector.broadcast %33 : vector<8x1xf32> to vector<8x256xf32>
    %66 = arith.addf %64, %65 : vector<8x256xf32>
    %67 = arith.addf %66, %26 : vector<8x256xf32>
    %cst_25 = arith.constant 0.000000e+00 : f32
    %68 = vector.broadcast %cst_25 : f32 to vector<8x256xf32>
    %69 = arith.maximumf %67, %68 : vector<8x256xf32>
    %70 = arith.select %21, %26, %69 : vector<8x256xi1>, vector<8x256xf32>
    %71 = tpu.concatenate %61, %52, %70, %43 in 0 : vector<8x256xf32>, vector<8x256xf32>, vector<8x256xf32>, vector<8x256xf32> -> vector<32x256xf32>
    %c0_26 = arith.constant 0 : index
    %c128 = arith.constant 128 : index
    %72 = vector.load %arg3[%c0_26, %c128] : memref<8x640xf32, #tpu.memory_space<vmem>>, vector<8x32xf32>
    %cst_27 = arith.constant dense<0.000000e+00> : vector<8x256xf32>
    %73 = tpu.matmul %72, %71, %cst_27 {dimension_numbers = #tpu.dot_dimension_numbers<[1], [0], [0], [1], [0, 0, 1, 1], [], []>} : vector<8x32xf32>, vector<32x256xf32>, vector<8x256xf32> -> vector<8x256xf32>
    %c0_28 = arith.constant 0 : index
    %c513 = arith.constant 513 : index
    %74 = vector.load %arg3[%c0_28, %c513] : memref<8x640xf32, #tpu.memory_space<vmem>>, vector<8x1xf32>
    %75 = vector.broadcast %74 : vector<8x1xf32> to vector<8x256xf32>
    %76 = arith.addf %73, %75 : vector<8x256xf32>
    %c0_29 = arith.constant 0 : index
    %c523 = arith.constant 523 : index
    %77 = vector.load %arg3[%c0_29, %c523] : memref<8x640xf32, #tpu.memory_space<vmem>>, vector<8x1xf32>
    %c0_30 = arith.constant 0 : index
    %c524 = arith.constant 524 : index
    %78 = vector.load %arg3[%c0_30, %c524] : memref<8x640xf32, #tpu.memory_space<vmem>>, vector<8x1xf32>
    %c0_31 = arith.constant 0 : index
    %c525 = arith.constant 525 : index
    %79 = vector.load %arg3[%c0_31, %c525] : memref<8x640xf32, #tpu.memory_space<vmem>>, vector<8x1xf32>
    %c0_32 = arith.constant 0 : index
    %c526 = arith.constant 526 : index
    %80 = vector.load %arg3[%c0_32, %c526] : memref<8x640xf32, #tpu.memory_space<vmem>>, vector<8x1xf32>
    %c0_33 = arith.constant 0 : index
    %c527 = arith.constant 527 : index
    %81 = vector.load %arg3[%c0_33, %c527] : memref<8x640xf32, #tpu.memory_space<vmem>>, vector<8x1xf32>
    %c0_34 = arith.constant 0 : index
    %c528 = arith.constant 528 : index
    %82 = vector.load %arg3[%c0_34, %c528] : memref<8x640xf32, #tpu.memory_space<vmem>>, vector<8x1xf32>
    %c0_35 = arith.constant 0 : index
    %c529 = arith.constant 529 : index
    %83 = vector.load %arg3[%c0_35, %c529] : memref<8x640xf32, #tpu.memory_space<vmem>>, vector<8x1xf32>
    %c0_36 = arith.constant 0 : index
    %c530 = arith.constant 530 : index
    %84 = vector.load %arg3[%c0_36, %c530] : memref<8x640xf32, #tpu.memory_space<vmem>>, vector<8x1xf32>
    %c1_i32_37 = arith.constant 1 : i32
    %85 = tpu.dynamic_rotate %76 by %c1_i32_37 dim 1 : vector<8x256xf32>, i32 -> vector<8x256xf32>
    %86 = vector.broadcast %80 : vector<8x1xf32> to vector<8x256xf32>
    %87 = arith.mulf %86, %85 : vector<8x256xf32>
    %88 = vector.broadcast %84 : vector<8x1xf32> to vector<8x256xf32>
    %89 = arith.addf %87, %88 : vector<8x256xf32>
    %90 = arith.addf %89, %76 : vector<8x256xf32>
    %cst_38 = arith.constant 0.000000e+00 : f32
    %91 = vector.broadcast %cst_38 : f32 to vector<8x256xf32>
    %92 = arith.maximumf %90, %91 : vector<8x256xf32>
    %93 = arith.select %6, %76, %92 : vector<8x256xi1>, vector<8x256xf32>
    %c255_i32_39 = arith.constant 255 : i32
    %94 = tpu.dynamic_rotate %76 by %c255_i32_39 dim 1 : vector<8x256xf32>, i32 -> vector<8x256xf32>
    %95 = vector.broadcast %78 : vector<8x1xf32> to vector<8x256xf32>
    %96 = arith.mulf %95, %94 : vector<8x256xf32>
    %97 = vector.broadcast %82 : vector<8x1xf32> to vector<8x256xf32>
    %98 = arith.addf %96, %97 : vector<8x256xf32>
    %99 = arith.addf %98, %76 : vector<8x256xf32>
    %cst_40 = arith.constant 0.000000e+00 : f32
    %100 = vector.broadcast %cst_40 : f32 to vector<8x256xf32>
    %101 = arith.maximumf %99, %100 : vector<8x256xf32>
    %102 = arith.select %11, %76, %101 : vector<8x256xi1>, vector<8x256xf32>
    %c16_i32_41 = arith.constant 16 : i32
    %103 = tpu.dynamic_rotate %76 by %c16_i32_41 dim 1 : vector<8x256xf32>, i32 -> vector<8x256xf32>
    %104 = vector.broadcast %77 : vector<8x1xf32> to vector<8x256xf32>
    %105 = arith.mulf %104, %103 : vector<8x256xf32>
    %106 = vector.broadcast %81 : vector<8x1xf32> to vector<8x256xf32>
    %107 = arith.addf %105, %106 : vector<8x256xf32>
    %108 = arith.addf %107, %76 : vector<8x256xf32>
    %cst_42 = arith.constant 0.000000e+00 : f32
    %109 = vector.broadcast %cst_42 : f32 to vector<8x256xf32>
    %110 = arith.maximumf %108, %109 : vector<8x256xf32>
    %111 = arith.select %16, %76, %110 : vector<8x256xi1>, vector<8x256xf32>
    %c240_i32_43 = arith.constant 240 : i32
    %112 = tpu.dynamic_rotate %76 by %c240_i32_43 dim 1 : vector<8x256xf32>, i32 -> vector<8x256xf32>
    %113 = vector.broadcast %79 : vector<8x1xf32> to vector<8x256xf32>
    %114 = arith.mulf %113, %112 : vector<8x256xf32>
    %115 = vector.broadcast %83 : vector<8x1xf32> to vector<8x256xf32>
    %116 = arith.addf %114, %115 : vector<8x256xf32>
    %117 = arith.addf %116, %76 : vector<8x256xf32>
    %cst_44 = arith.constant 0.000000e+00 : f32
    %118 = vector.broadcast %cst_44 : f32 to vector<8x256xf32>
    %119 = arith.maximumf %117, %118 : vector<8x256xf32>
    %120 = arith.select %21, %76, %119 : vector<8x256xi1>, vector<8x256xf32>
    %121 = tpu.concatenate %111, %102, %120, %93 in 0 : vector<8x256xf32>, vector<8x256xf32>, vector<8x256xf32>, vector<8x256xf32> -> vector<32x256xf32>
    %c0_45 = arith.constant 0 : index
    %c256 = arith.constant 256 : index
    %122 = vector.load %arg3[%c0_45, %c256] : memref<8x640xf32, #tpu.memory_space<vmem>>, vector<8x32xf32>
    %cst_46 = arith.constant dense<0.000000e+00> : vector<8x256xf32>
    %123 = tpu.matmul %122, %121, %cst_46 {dimension_numbers = #tpu.dot_dimension_numbers<[1], [0], [0], [1], [0, 0, 1, 1], [], []>} : vector<8x32xf32>, vector<32x256xf32>, vector<8x256xf32> -> vector<8x256xf32>
    %c0_47 = arith.constant 0 : index
    %c514 = arith.constant 514 : index
    %124 = vector.load %arg3[%c0_47, %c514] : memref<8x640xf32, #tpu.memory_space<vmem>>, vector<8x1xf32>
    %125 = vector.broadcast %124 : vector<8x1xf32> to vector<8x256xf32>
    %126 = arith.addf %123, %125 : vector<8x256xf32>
    %cst_48 = arith.constant 0.000000e+00 : f32
    %127 = vector.broadcast %cst_48 : f32 to vector<8x256xf32>
    %128 = arith.maximumf %126, %127 : vector<8x256xf32>
    %c0_49 = arith.constant 0 : index
    %c384 = arith.constant 384 : index
    %129 = vector.load %arg3[%c0_49, %c384] : memref<8x640xf32, #tpu.memory_space<vmem>>, vector<1x8xf32>
    %cst_50 = arith.constant dense<0.000000e+00> : vector<1x256xf32>
    %130 = tpu.matmul %129, %128, %cst_50 {dimension_numbers = #tpu.dot_dimension_numbers<[1], [0], [0], [1], [0, 0, 1, 1], [], []>} : vector<1x8xf32>, vector<8x256xf32>, vector<1x256xf32> -> vector<1x256xf32>
    %cst_51 = arith.constant 0.000000e+00 : f32
    %131 = vector.broadcast %cst_51 : f32 to vector<1x256xf32>
    %132 = arith.subf %131, %130 : vector<1x256xf32>
    %133 = math.exp %132 : vector<1x256xf32>
    %cst_52 = arith.constant 1.000000e+00 : f32
    %134 = vector.broadcast %cst_52 : f32 to vector<1x256xf32>
    %135 = arith.addf %134, %133 : vector<1x256xf32>
    %cst_53 = arith.constant 1.000000e+00 : f32
    %136 = vector.broadcast %cst_53 : f32 to vector<1x256xf32>
    %137 = arith.divf %136, %135 : vector<1x256xf32>
    %c0_54 = arith.constant 0 : index
    %c0_55 = arith.constant 0 : index
    %c0_56 = arith.constant 0 : index
    %138 = vector.load %arg4[%c0_54, %c0_55, %c0_56] : memref<1x1x256xf32, #tpu.memory_space<vmem>>, vector<1x1x256xf32>
    %139 = vector.shape_cast %138 : vector<1x1x256xf32> to vector<1x256xf32>
    %140 = vector.shape_cast %137 : vector<1x256xf32> to vector<1x1x256xf32>
    tpu.vector_store %arg4[%c0_54, %c0_55, %c0_56], %140 {strides = array<i32>} : memref<1x1x256xf32, #tpu.memory_space<vmem>>, vector<1x1x256xf32>,
    return
  }
  func.func @transform_0(%arg0: i32) -> (i32, i32, i32) {
    %c0_i32 = arith.constant 0 : i32
    %c0_i32_0 = arith.constant 0 : i32
    %c0_i32_1 = arith.constant 0 : i32
    return %arg0, %c0_i32, %c0_i32_0 : i32, i32, i32
  }
  func.func @transform_1(%arg0: i32) -> (i32, i32) {
    %c0_i32 = arith.constant 0 : i32
    %c0_i32_0 = arith.constant 0 : i32
    %c0_i32_1 = arith.constant 0 : i32
    return %c0_i32, %c0_i32_0 : i32, i32
  }
  func.func @transform_2(%arg0: i32) -> (i32, i32) {
    %c0_i32 = arith.constant 0 : i32
    %c0_i32_0 = arith.constant 0 : i32
    %c0_i32_1 = arith.constant 0 : i32
    return %c0_i32, %c0_i32_0 : i32, i32
  }
  func.func @transform_3(%arg0: i32) -> (i32, i32, i32) {
    %c0_i32 = arith.constant 0 : i32
    %c0_i32_0 = arith.constant 0 : i32
    %c0_i32_1 = arith.constant 0 : i32
    return %arg0, %c0_i32, %c0_i32_0 : i32, i32, i32
  }
}

</mosaic_0001>

<bundles_post_ra>
// kernel: tpu_custom_call.1
= control target key start
LH: loop header
LB: loop body
LE: loop exit
PB: predicated region body
PF: predicated region fallthrough
CT: control target
= control target key end

     0   :  { %8 = vsyncpa [#allocation3], 0  ;;  %s1751_s0 = inlined_call_operand.hbm [shape: f32[2,8,256], index: 0, kind: input, shape index: {}]   ;;  %s1752_s1 = inlined_call_operand.hbm [shape: f32[8,256], index: 1, kind: input, shape index: {}]   ;;  %s1753_s2 = inlined_call_operand.hbm [shape: f32[8,640], index: 2, kind: input, shape index: {}]   ;;  %s1754_s3 = inlined_call_operand.hbm [shape: f32[2,1,256], index: 3, kind: output, shape index: {}]  }
   0x1   :  { %10 = vsyncpa [#allocation3 + $0x1], 0 }
   0x2   :  { %11 = vsyncpa [#allocation6], 0 }
   0x3   :  { %12 = vsyncpa [#allocation4], 0 }
   0x4   :  { %14 = vsyncpa [#allocation4 + $0x1], 0  ;;  %s1294_s12 = smov 0   ;;  %s1296_s13 = smov 0  }
   0x5   :  { %s1298_s14 = smov 0   ;;  %s1300_s15 = smov 0  }
   0x6 LB: > { %s1315_s16 = sadd.s32 4294967295, %s1243_s15   ;;  %s928_s17 = sadd.s32 4294967294, %s1243_s15   ;;  %s1243_s15 = sphi %s1300_s15, %s1790_s15   ;;  %s1239_s14 = sphi %s1298_s14, %s1789_s14   ;;  %s1235_s13 = sphi %s1296_s13, %s1788_s13   ;;  %s1231_s12 = sphi %s1294_s12, %s1787_s12  }
   0x7   : > { %p40_p0 = scmp.ne.s32.totalorder %s1235_s13, %s1231_s12  ;;  %p1755_p1 = scmp.eq.s32.totalorder %s1315_s16, 0 }
   0x8   : > { %p112_p3 = scmp.eq.s32.totalorder %s928_s17, 1  ;;  %p929_p5 = scmp.ge.s32.totalorder %s1243_s15, 1 }
   0x9   : > { %p1324_p4 = por %p1755_p1, %p40_p0  ;;  %p119_p7 = scmp.lt.s32.totalorder %s1243_s15, 3 }
   0xa   : > { %p1329_p6 = por %p112_p3, %p40_p0  ;;  %s1245_s21 = smov [#allocation5]  }
   0xb   : > { %s1758_s18 = scalar_select %p1324_p4, 1, 0 }
   0xc   : > { %s1759_s19 = scalar_select %p1329_p6, 1, 0 }
   0xd   : > { %p1334_p8 = pnand %p929_p5, %p119_p7  ;;  %s132_s22 = sshll.u32 %s1245_s21, 4  ;;  %s133_s22 = int_to_ptr.vmem [resolvable:$true] %s132_s22 }
   0xe   : > { %s1246_s23 = smov [#allocation7]   ;;  %s1350_s26 = sadd.s32 1, %s1243_s15  }
   0xf   : > { %s1760_s20 = scalar_select %p1334_p8, 1, 0 }
  0x10   : > { %p980_p10 = pneg %p1334_p8  ;;  %s143_s24 = sshll.u32 %s1246_s23, 4  ;;  %s1347_s24 = int_to_ptr.vmem [resolvable:$true] %s143_s24 }
  0x11   : > { %s24_s27 = ssub.s32 %s1243_s15, %s1350_s26  ;;  %s1087_s30 = scalar_lea.hbm %s1752_s1, 256 }
  0x12   : > { %p1343_p11 = pnand %p980_p10, %p1755_p1  ;;  %p1088_p12 = scmp.ne.s32.totalorder %s1752_s1, %s1087_s30 }
  0x13   : > { %p1094_p5 = scmp.lt.u32.totalorder %s1087_s30, %s1752_s1 }
  0x14   : > { %p1089_p13 = pneg %p1343_p11 }
  0x16   : > { %p1090_p0 = pnand %p1089_p13, %p1088_p12 }
  0x18   : > { %p1091_p3 = pneg %p1090_p0 }
  0x1a   : > { %p1096_p7 = pnand %p1094_p5, %p1091_p3 }
  0x1c   : > { %1099 = shalt.err (!%p1096_p7)
}
  0x1d   : > { %s1100_s8 = scalar_lea.vmem %s133_s22, 256  ;;  %p1108_p2 = scmp.lt.s32.totalorder %s133_s22, %s133_s22 }
  0x1e   : > { %p1101_p10 = scmp.ne.s32.totalorder %s133_s22, %s1100_s8  ;;  %p1109_p6 = scmp.lt.s32.totalorder %s1100_s8, %s1100_s8 }
  0x20   : > { %p1103_p9 = pnand %p1101_p10, %p1089_p13  ;;  %p1110_p4 = por %p1109_p6, %p1108_p2 }
  0x22   : > { %p1104_p1 = pneg %p1103_p9 }
  0x24   : > { %p1111_p8 = pnand %p1110_p4, %p1104_p1 }
  0x26   : > { %1114 = shalt.err (!%p1111_p8)
}
  0x27   : > { %983 = dma.hbm_to_vmem [thread:$0]  (!%p1343_p11), %s1752_s1, 256, %s133_s22, [#allocation6]  }
  0x28   : > { %s1115_s21 = scalar_lea.hbm %s1753_s2, 640 }
  0x29   : > { %p1116_p9 = scmp.ne.s32.totalorder %s1753_s2, %s1115_s21  ;;  %p1122_p4 = scmp.lt.u32.totalorder %s1115_s21, %s1753_s2 }
  0x2b   : > { %p1118_p2 = pnand %p1116_p9, %p1089_p13 }
  0x2d   : > { %p1119_p1 = pneg %p1118_p2 }
  0x2f   : > { %p1124_p6 = pnand %p1122_p4, %p1119_p1 }
  0x31   : > { %1127 = shalt.err (!%p1124_p6)
}
  0x32   : > { %s1128_s22 = scalar_lea.vmem %s1347_s24, 640  ;;  %p1136_p3 = scmp.lt.s32.totalorder %s1347_s24, %s1347_s24 }
  0x33   : > { %p1129_p8 = scmp.ne.s32.totalorder %s1347_s24, %s1128_s22  ;;  %p1137_p5 = scmp.lt.s32.totalorder %s1128_s22, %s1128_s22 }
  0x35   : > { %p1131_p12 = pnand %p1129_p8, %p1089_p13  ;;  %p1138_p7 = por %p1137_p5, %p1136_p3 }
  0x37   : > { %p1132_p0 = pneg %p1131_p12 }
  0x39   : > { %p1139_p10 = pnand %p1138_p7, %p1132_p0 }
  0x3b   : > { %1142 = shalt.err (!%p1139_p10)
}
  0x3c   : > { %986 = dma.hbm_to_vmem [thread:$0]  (!%p1343_p11), %s1753_s2, 640, %s1347_s24, [#allocation6]  }
  0x3d   : > { %p25_p13 = scmp.eq.s32.totalorder %s24_s27, 0  ;;  %s27_s6 = sadd.s32 1, %s1239_s14 }
  0x3e   : > { %p34_p9 = scmp.ne.s32.totalorder %s1239_s14, %s1235_s13  ;;  %p35_p2 = scmp.eq.s32.totalorder %s1243_s15, 0 }
  0x3f   : > { %s1409_s25 = scalar_select %p25_p13, %s1239_s14, %s27_s6  }
  0x40   : > { %p36_p1 = por %p35_p2, %p34_p9  ;;  %p1762_p4 = scmp.eq.s32.totalorder %s1315_s16, 1 }
  0x41   : > { %p997_p8 = scmp.lt.s32.totalorder %s1243_s15, 2  ;;  %s154_s8 = sand.u32 1, %s1239_s14  }
  0x42   : > { %p1413_p6 = por %p1762_p4, %p34_p9  ;;  %s933_s9 = sshll.u32 %s154_s8, 4 }
  0x43   : > { %s950_s10 = sshll.u32 %s1243_s15, 8  ;;  %s158_s27 = scalar_lea.vmem [#allocation2], %s933_s9 }
  0x44   : > { %s1423_s24 = scalar_lea.hbm %s1751_s0, %s950_s10  ;;  %s166_s21 = sshll.u32 %s158_s27, 4  ;;  %s1425_s21 = int_to_ptr.vmem [resolvable:$true] %s166_s21 }
  0x45   : > { %p1427_p11 = pnand %p997_p8, %p36_p1  ;;  %s155_s28 = scalar_lea.sflag [#allocation3], %s154_s8 }
  0x46   : > { %s1143_s29 = scalar_lea.hbm %s1423_s24, 256  ;;  %s1148_s4 = scalar_lea.hbm %s1751_s0, 512 }
  0x47   : > { %p1144_p12 = scmp.ne.s32.totalorder %s1423_s24, %s1143_s29  ;;  %p1145_p0 = pneg %p1427_p11 }
  0x48   : > { %p1149_p7 = scmp.lt.u32.totalorder %s1423_s24, %s1751_s0  ;;  %p1150_p10 = scmp.lt.u32.totalorder %s1148_s4, %s1143_s29 }
  0x49   : > { %p1146_p3 = pnand %p1145_p0, %p1144_p12  ;;  %p1152_p9 = scmp.lt.u32.totalorder %s1143_s29, %s1423_s24 }
  0x4a   : > { %p1151_p13 = por %p1150_p10, %p1149_p7 }
  0x4b   : > { %p1147_p5 = pneg %p1146_p3 }
  0x4c   : > { %p1153_p2 = por %p1152_p9, %p1151_p13 }
  0x4e   : > { %p1154_p1 = pnand %p1153_p2, %p1147_p5 }
  0x50   : > { %1157 = shalt.err (!%p1154_p1)
}
  0x51   : > { %s1158_s8 = scalar_lea.vmem %s1425_s21, 256  ;;  %s1247_s9 = smov [#allocation2]  }
  0x52   : > { %p1159_p4 = scmp.ne.s32.totalorder %s1425_s21, %s1158_s8  ;;  %s1163_s10 = sshll.u32 %s1247_s9, 4  ;;  %s1164_s10 = int_to_ptr.vmem [resolvable:$false] %s1163_s10 }
  0x53   : > { %s1165_s11 = scalar_lea.vmem %s1164_s10, 512  ;;  %p1166_p3 = scmp.lt.s32.totalorder %s1425_s21, %s1164_s10 }
  0x54   : > { %p1161_p8 = pnand %p1159_p4, %p1145_p0  ;;  %p1167_p7 = scmp.lt.s32.totalorder %s1165_s11, %s1158_s8 }
  0x56   : > { %p1162_p12 = pneg %p1161_p8  ;;  %p1168_p10 = por %p1167_p7, %p1166_p3 }
  0x58   : > { %p1169_p13 = pnand %p1168_p10, %p1162_p12 }
  0x5a   : > { %1172 = shalt.err (!%p1169_p13)
}
  0x5b   : > { %990 = dma.hbm_to_vmem [thread:$0]  (!%p1427_p11), %s1423_s24, 256, %s1425_s21, %s155_s28  }
  0x5c   : > { %p1765_p5 = scmp.ne.s32.totalorder %s1760_s20, 0 }
  0x5d   : > { %s1459_s17 = sand.u32 (!%p1765_p5), 1, %s1235_s13   ;;  %p1766_p0 = scmp.ne.s32.totalorder (!%p1765_p5), %s1758_s18, 0 }
  0x5e   : > { %175 = sbr.rel (%p1765_p5) target bundleno = 1309 (0x51d), region = 32  ;;  %s937_s27 = sshll.u32 (!%p1765_p5), %s1459_s17, 4 }
  0x5f   : > { %s178_s29 = scalar_lea.sflag (!%p1765_p5), [#allocation3], %s1459_s17  ;;  %s181_s30 = scalar_lea.vmem (!%p1765_p5), [#allocation2], %s937_s27 }
  0x65   : > { %1218 = dma.done.wait (%p1766_p0), %s178_s29, 256  }
  0x66   : > { %1220 = vsyncadd (%p1766_p0), %s178_s29, 4294967040  ;;  %p1767_p9 = scmp.eq.s32.totalorder %s1315_s16, 0 }
  0x68   : > { %1222 = dma.done.wait (%p1767_p9), [#allocation6], 896   ;;  %p1768_p11 = pmov %p1767_p9 }
  0x69   : > { %v1248_v0 = vmov 0.0   ;;  %v1249_v1 = vmov 0   ;;  %v1250_v2 = vmov 3   ;;  %v213_v3 = vld [vmem:[%s181_s30 + $0x8] sm:$0xff]  ;;  %v212_v4 = vld [vmem:[%s181_s30] sm:$0xff]  ;;  %vm280_vm0 = vcmask 64512  }
  0x6a   : > { %1224 = vsyncadd (%p1768_p11), [#allocation6], 4294966400  ;;  %348 = vmatprep.mubr.f32.mxu0 %v1248_v0  ;;  %1060 = vset.pattern.permute.xlu0 %v1249_v1  ;;  %v273_v5 = vld [vmem:[#allocation7] sm:$0xff]  ;;  %v1251_v7 = vmov 4   ;;  %v1252_v8 = vmov 8   ;;  %v1253_v9 = vmov 6   ;;  %v216_v35 = vlaneseq }
  0x6b   : > { %1062 = vset.pattern.permute.xlu1 %v1250_v2  ;;  %530 = vmatprep.mubr.f32.mxu1 %v1248_v0  ;;  %v1473_v6 = vld [vmem:[#allocation7 + $0x20] sm:$0xff]  ;;  %v1254_v10 = vmov 7   ;;  %v1255_v11 = vmov 9   ;;  %v1256_v12 = vmov 5   ;;  %v1257_v13 = vmov 10   ;;  %s1258_s18 = smov 1  }
  0x6c   : > { %284 = vmatprep.subr.mxu0 %v213_v3  ;;  %277 = vperm.xlu0 %1060, %v1473_v6   ;;  %s1259_s20 = smov 127   ;;  %s1260_s24 = smov 16   ;;  %v1262_v19 = vmov 1   ;;  %v1263_v20 = vmov 12   ;;  %v1264_v21 = vmov 11   ;;  %v1265_v22 = vmov 16  }
  0x6d   : > { %285 = vmatpush1.msra.mxu0 %v212_v4  ;;  %415 = vperm.xlu1 %1062, %v1473_v6   ;;  %s1261_s21 = smov 112   ;;  %v1266_v23 = vmov 15   ;;  %v1267_v24 = vmov 13   ;;  %v1268_v25 = vmov 14   ;;  %v1269_v26 = vmov 18   ;;  %s940_s23 = sshll.u32 %s1459_s17, 1 }
  0x6e   : > { %941 = vmatmul.mubr.msk.f32.vlgmr.msra.gmra.mrb[0].mxu0 %vm280_vm0, %v273_v5  ;;  %v1270_v27 = vmov 17   ;;  %v1520_v37 = vand.u32 127, %v216_v35  ;;  %v1523_v39 = vshrl.u32 %v216_v35, 7  ;;  %v229_v45 = vld [vmem:[#allocation5 + $0x1] ss:$8 sm:$0x3] }
  0x6f   : > { %705 = vmatprep.mubr.f32.mxu0 %v1248_v0  ;;  %v244_v49 = vld [vmem:[#allocation5 + $0x2] ss:$8 sm:$0x3]  ;;  %v214_v5 = vld [vmem:[#allocation5] ss:$8 sm:$0x3] }
  0x70   : > { %1061 = vset.pattern.permute.xlu0 %v1251_v7  ;;  %vm386_vm1 = vcmp.lt.s32.totalorder %v1520_v37, 127  ;;  %v1527_v42 = vsub.s32 1, %v1523_v39  ;;  %v1534_v46 = vsub.s32 0, %v1523_v39  ;;  %vm411_vm2 = vcmp.lt.s32.totalorder %v1520_v37, 16  ;;  %s951_s28 = sshll.u32 %s1315_s16, 5  ;;  %s211_s22 = scalar_lea.vmem [#allocation8], %s940_s23 }
  0x71   : > { %1063 = vset.pattern.permute.xlu1 %v1252_v8  ;;  %390 = vperm.xlu0 %1061, %v1473_v6   ;;  %vm361_vm3 = vcmp.lt.s32.totalorder %v1520_v37, 1  ;;  %vm436_vm5 = vcmp.lt.s32.totalorder %v1520_v37, 112  ;;  %vm462_vm13 = vcmask 261120   ;;  %s839_s4 = sshll.u32 %s211_s22, 4  ;;  %vm821_vm14 = vcmp.lt.s32.totalorder %v216_v35, 256  ;;  %s1707_s8 = scalar_lea.hbm %s1754_s3, %s951_s28  ;;  %s1709_s4 = int_to_ptr.vmem [resolvable:$true] %s839_s4 }
  0x72   : > { %396 = vperm.xlu1 %1063, %v1473_v6   ;;  %v238_v54 = vrot.slane %v229_v45, %v1527_v42  ;;  %v234_v57 = vrot.slane %v229_v45, %v1534_v46  ;;  %v253_v60 = vrot.slane %v244_v49, %v1527_v42  ;;  %v249_v62 = vrot.slane %v244_v49, %v1534_v46  ;;  %s825_s9 = scalar_lea.sflag [#allocation4], %s1459_s17  ;;  %s1173_s10 = scalar_lea.vmem %s1709_s4, 32 }
  0x73   : > { %p1174_p2 = scmp.ne.s32.totalorder %s1709_s4, %s1173_s10  ;;  %s1273_s16 = smov [#allocation8]  }
  0x74   : > { %vm1548_vm4 = vcmp.gt.f32.partialorder %v238_v54, 0.5  ;;  %vm1557_vm6 = vcmp.gt.f32.partialorder %v234_v57, 0.5  ;;  %vm1562_vm7 = vcmp.gt.f32.partialorder %v253_v60, 0.5  ;;  %vm1567_vm8 = vcmp.gt.f32.partialorder %v249_v62, 0.5  ;;  %s1177_s11 = sshll.u32 %s1273_s16, 4  ;;  %s1178_s11 = int_to_ptr.vmem [resolvable:$false] %s1177_s11 }
  0x75   : > { %1065 = vset.pattern.permute.xlu0 %v1253_v9  ;;  %p1175_p1 = pnand %p1174_p2, %p1413_p6  ;;  %s1179_s27 = scalar_lea.vmem %s1178_s11, 64 }
  0x76   : > { %1064 = vset.pattern.permute.xlu1 %v1254_v10  ;;  %365 = vperm.xlu0 %1065, %v1473_v6   ;;  %p1180_p8 = scmp.lt.s32.totalorder %s1709_s4, %s1178_s11  ;;  %p1181_p12 = scmp.lt.s32.totalorder %s1179_s27, %s1173_s10 }
  0x77   : > { %421 = vperm.xlu1 %1064, %v1473_v6   ;;  %p1176_p4 = pneg %p1175_p1 }
  0x78   : > { %p1182_p3 = por %p1181_p12, %p1180_p8 }
  0x7a   : > { %1068 = vset.pattern.permute.xlu0 %v1255_v11  ;;  %p1183_p7 = pnand %p1182_p3, %p1176_p4 }
  0x7b   : > { %1066 = vset.pattern.permute.xlu1 %v1256_v12  ;;  %446 = vperm.xlu0 %1068, %v1473_v6  }
  0x7c   : > { %440 = vperm.xlu1 %1066, %v1473_v6  }
  0x7f   : > { %1069 = vset.pattern.permute.xlu0 %v1262_v19  ;;  %v223_v19 = vrot.slane %v214_v5, %v1527_v42 }
  0x80   : > { %1067 = vset.pattern.permute.xlu1 %v1257_v13 }
  0x81   : > { %371 = vperm.xlu1 %1067, %v1473_v6   ;;  %vm1599_vm9 = vcmp.gt.f32.partialorder %v223_v19, 0.5 }
  0x85   : > { %1070 = vset.pattern.permute.xlu1 %v1263_v20 }
  0xeb   : > { %v278_v14 = vpop.permute.xlu0 %277 }
  0xec   : > { %v416_v28 = vpop.permute.xlu1 %415 }
  0xf0   : > { %v391_v31 = vpop.permute.xlu0 %390 }
  0xf1   : > { %v397_v29 = vpop.permute.xlu1 %396 }
  0xf5   : > { %v366_v33 = vpop.permute.xlu0 %365 }
  0xf6   : > { %v422_v30 = vpop.permute.xlu1 %421 }
  0xfa   : > { %v1517_v36 = vpop.permute.xlu0 %446 }
  0xfb   : > { %v1515_v32 = vpop.permute.xlu1 %440 }
 0x100   : > { %v372_v34 = vpop.permute.xlu1 %371 }
 0x141   : > { %v350_v15 = vpop.f32.mrb[0].mxu0 }
 0x142   : > { %v1486_v16 = vadd.f32 %v350_v15, %v278_v14  ;;  %v352_v17 = vpop.f32.mrb[1].mxu0 }
 0x143   : > { %v1492_v18 = vadd.f32 %v352_v17, %v278_v14 }
 0x144   : > { %355 = vrot.lane.b32.xlu1 %v1486_v16, %s1258_s18  ;;  %382 = vrot.lane.b32.xlu0 %v1486_v16, %s1259_s20 }
 0x148   : > { %384 = vrot.lane.b32.xlu1 %v1492_v18, %s1259_s20  ;;  %407 = vrot.lane.b32.xlu0 %v1486_v16, %s1260_s24 }
 0x14c   : > { %409 = vrot.lane.b32.xlu1 %v1492_v18, %s1260_s24  ;;  %432 = vrot.lane.b32.xlu0 %v1486_v16, %s1261_s21 }
 0x150   : > { %357 = vrot.lane.b32.xlu1 %v1492_v18, %s1258_s18  ;;  %459 = vperm.xlu0 %1069, %v1473_v6  }
 0x154   : > { %434 = vrot.lane.b32.xlu1 %v1492_v18, %s1261_s21  ;;  %1072 = vset.pattern.permute.xlu0 %v1265_v22 }
 0x155   : > { %574 = vperm.xlu0 %1072, %v1473_v6  }
 0x158   : > { %568 = vperm.xlu1 %1070, %v1473_v6  }
 0x159   : > { %1075 = vset.pattern.permute.xlu0 %v1267_v24 }
 0x15a   : > { %616 = vperm.xlu0 %1075, %v1473_v6  }
 0x15c   : > { %1071 = vset.pattern.permute.xlu1 %v1264_v21 }
 0x15d   : > { %592 = vperm.xlu1 %1071, %v1473_v6  }
 0x161   : > { %1073 = vset.pattern.permute.xlu1 %v1266_v23 }
 0x162   : > { %598 = vperm.xlu1 %1073, %v1473_v6  }
 0x166   : > { %1074 = vset.pattern.permute.xlu1 %v1268_v25 }
 0x167   : > { %544 = vperm.xlu1 %1074, %v1473_v6  }
 0x16b   : > { %1076 = vset.pattern.permute.xlu1 %v1269_v26  ;;  %v259_v26 = vld [vmem:[#allocation5 + $0x3] ss:$8 sm:$0x3] }
 0x16c   : > { %550 = vperm.xlu1 %1076, %v1473_v6  }
 0x170   : > { %1077 = vset.pattern.permute.xlu1 %v1270_v27 }
 0x171   : > { %622 = vperm.xlu1 %1077, %v1473_v6  }
 0x1b6   : > { %v356_v38 = vpop.permute.xlu1 %355  ;;  %v383_v40 = vpop.permute.xlu0 %382 }
 0x1ba   : > { %v385_v41 = vpop.permute.xlu1 %384  ;;  %v408_v52 = vpop.permute.xlu0 %407 }
 0x1bb   : > { %v387_v43 = vsel %vm386_vm1, %v383_v40, %v385_v41  ;;  %v388_v44 = vsel %vm386_vm1, %v385_v41, %v383_v40 }
 0x1bc   : > { %v393_v47 = vmul.f32 %v391_v31, %v387_v43  ;;  %v394_v48 = vmul.f32 %v391_v31, %v388_v44  ;;  %v268_v43 = vrot.slane %v259_v26, %v1527_v42  ;;  %v264_v44 = vrot.slane %v259_v26, %v1534_v46 }
 0x1be   : > { %v399_v50 = vadd.f32 %v397_v29, %v393_v47  ;;  %v400_v51 = vadd.f32 %v397_v29, %v394_v48  ;;  %v410_v53 = vpop.permute.xlu1 %409  ;;  %v433_v20 = vpop.permute.xlu0 %432  ;;  %vm1603_vm10 = vcmp.gt.f32.partialorder %v268_v43, 0.5  ;;  %vm1611_vm12 = vcmp.gt.f32.partialorder %v264_v44, 0.5 }
 0x1bf   : > { %v412_v55 = vsel %vm411_vm2, %v408_v52, %v410_v53  ;;  %v413_v56 = vsel %vm411_vm2, %v410_v53, %v408_v52 }
 0x1c0   : > { %v418_v58 = vmul.f32 %v416_v28, %v413_v56  ;;  %v419_v59 = vmul.f32 %v416_v28, %v412_v55  ;;  %v402_v61 = vadd.f32 %v400_v51, %v1492_v18  ;;  %v401_v63 = vadd.f32 %v399_v50, %v1486_v16 }
 0x1c2   : > { %v424_v1 = vadd.f32 %v422_v30, %v418_v58  ;;  %v425_v2 = vadd.f32 %v422_v30, %v419_v59  ;;  %v358_v3 = vpop.permute.xlu1 %357  ;;  %v404_v14 = vmax.f32 %v402_v61, 0.0  ;;  %v403_v24 = vmax.f32 %v401_v63, 0.0 }
 0x1c3   : > { %v362_v7 = vsel %vm361_vm3, %v356_v38, %v358_v3  ;;  %v363_v8 = vsel %vm361_vm3, %v358_v3, %v356_v38  ;;  %v219_v30 = vrot.slane %v214_v5, %v1534_v46 }
 0x1c4   : > { %v426_v10 = vadd.f32 %v424_v1, %v1486_v16  ;;  %v368_v11 = vmul.f32 %v366_v33, %v363_v8  ;;  %v369_v12 = vmul.f32 %v366_v33, %v362_v7  ;;  %v427_v15 = vadd.f32 %v425_v2, %v1492_v18  ;;  %v457_v1 = vld [vmem:[#allocation7 + $0x8] sm:$0xff] }
 0x1c5   : > { %v405_v48 = vsel %vm1557_vm6, %v1486_v16, %v403_v24  ;;  %vm1607_vm11 = vcmp.gt.f32.partialorder %v219_v30, 0.5 }
 0x1c6   : > { %v374_v21 = vadd.f32 %v372_v34, %v368_v11  ;;  %v375_v22 = vadd.f32 %v372_v34, %v369_v12  ;;  %v435_v23 = vpop.permute.xlu1 %434  ;;  %v428_v25 = vmax.f32 %v426_v10, 0.0  ;;  %v429_v29 = vmax.f32 %v427_v15, 0.0 }
 0x1c7   : > { %v437_v27 = vsel %vm436_vm5, %v433_v20, %v435_v23  ;;  %v438_v28 = vsel %vm436_vm5, %v435_v23, %v433_v20 }
 0x1c8   : > { %v376_v31 = vadd.f32 %v374_v21, %v1486_v16  ;;  %v377_v33 = vadd.f32 %v375_v22, %v1492_v18  ;;  %v443_v38 = vmul.f32 %v1515_v32, %v437_v27  ;;  %v444_v34 = vmul.f32 %v1515_v32, %v438_v28 }
 0x1c9   : > { %v431_v40 = vsel %vm1562_vm7, %v1492_v18, %v429_v29  ;;  %v430_v41 = vsel %vm1567_vm8, %v1486_v16, %v428_v25  ;;  %v406_v32 = vsel %vm1548_vm4, %v1492_v18, %v404_v14 }
 0x1ca   : > { %v449_v45 = vadd.f32 %v1517_v36, %v443_v38  ;;  %v450_v47 = vadd.f32 %v1517_v36, %v444_v34  ;;  %v952_v49 = vpack.c.bf16 %v406_v32, %v431_v40  ;;  %v954_v50 = vpack.c.bf16 %v405_v48, %v430_v41 }
 0x1cb   : > { %v378_v51 = vmax.f32 %v376_v31, 0.0  ;;  %v379_v52 = vmax.f32 %v377_v33, 0.0 }
 0x1cc   : > { %v451_v42 = vadd.f32 %v449_v45, %v1486_v16  ;;  %v452_v46 = vadd.f32 %v450_v47, %v1492_v18  ;;  %953 = vmatprep.subr.bf16.mxu1 %v952_v49 }
 0x1cd   : > { %955 = vmatpush1.bf16.msra.mxu1 %v954_v50  ;;  %v381_v58 = vsel %vm1599_vm9, %v1492_v18, %v379_v52  ;;  %v380_v60 = vsel %vm1607_vm11, %v1486_v16, %v378_v51 }
 0x1ce   : > { %v453_v56 = vmax.f32 %v451_v42, 0.0  ;;  %v454_v57 = vmax.f32 %v452_v46, 0.0 }
 0x1cf   : > { %v460_v2 = vpop.permute.xlu0 %459 }
 0x1d0   : > { %v456_v59 = vsel %vm1603_vm10, %v1492_v18, %v454_v57  ;;  %v455_v61 = vsel %vm1611_vm12, %v1486_v16, %v453_v56 }
 0x1d1   : > { %v956_v62 = vpack.c.bf16 %v381_v58, %v456_v59  ;;  %v958_v63 = vpack.c.bf16 %v380_v60, %v455_v61 }
 0x1d3   : > { %957 = vmatprep.subr.bf16.mxu1 %v956_v62 }
 0x1d4   : > { %959 = vmatpush1.bf16.msra.mxu1 %v958_v63  ;;  %v575_v14 = vpop.permute.xlu0 %574 }
 0x1d7   : > { %942 = vmatmul.mubr.msk.f32.vlgmr.msra.gmra.mrb[0].mxu1 %vm462_vm13, %v457_v1  ;;  %v569_v7 = vpop.permute.xlu1 %568 }
 0x1d8   : > { %782 = vmatprep.mubr.f32.mxu1 %v1248_v0  ;;  %v1271_v0 = vmov 2  }
 0x1d9   : > { %1078 = vset.pattern.permute.xlu0 %v1271_v0  ;;  %v617_v19 = vpop.permute.xlu0 %616 }
 0x1dc   : > { %v593_v8 = vpop.permute.xlu1 %592 }
 0x1e1   : > { %v599_v10 = vpop.permute.xlu1 %598 }
 0x1e6   : > { %v545_v11 = vpop.permute.xlu1 %544 }
 0x1eb   : > { %v551_v12 = vpop.permute.xlu1 %550 }
 0x1f0   : > { %v623_v15 = vpop.permute.xlu1 %622 }
 0x2aa   : > { %v532_v18 = vpop.f32.mrb[0].mxu1 }
 0x2ab   : > { %v1629_v3 = vadd.f32 %v532_v18, %v460_v2  ;;  %v534_v5 = vpop.f32.mrb[1].mxu1 }
 0x2ac   : > { %v1635_v16 = vadd.f32 %v534_v5, %v460_v2 }
 0x2ad   : > { %537 = vrot.lane.b32.xlu0 %v1629_v3, %s1258_s18  ;;  %561 = vrot.lane.b32.xlu1 %v1629_v3, %s1259_s20 }
 0x2b1   : > { %563 = vrot.lane.b32.xlu0 %v1635_v16, %s1259_s20  ;;  %585 = vrot.lane.b32.xlu1 %v1629_v3, %s1260_s24 }
 0x2b5   : > { %587 = vrot.lane.b32.xlu0 %v1635_v16, %s1260_s24  ;;  %539 = vrot.lane.b32.xlu1 %v1635_v16, %s1258_s18 }
 0x2b9   : > { %609 = vrot.lane.b32.xlu0 %v1629_v3, %s1261_s21  ;;  %611 = vrot.lane.b32.xlu1 %v1635_v16, %s1261_s21 }
 0x2bd   : > { %635 = vperm.xlu0 %1078, %v1473_v6  }
 0x31f   : > { %v562_v20 = vpop.permute.xlu1 %561  ;;  %v538_v21 = vpop.permute.xlu0 %537 }
 0x323   : > { %v586_v22 = vpop.permute.xlu1 %585  ;;  %v564_v23 = vpop.permute.xlu0 %563 }
 0x324   : > { %v565_v24 = vsel %vm386_vm1, %v562_v20, %v564_v23  ;;  %v566_v25 = vsel %vm386_vm1, %v564_v23, %v562_v20 }
 0x325   : > { %v571_v26 = vmul.f32 %v569_v7, %v565_v24  ;;  %v572_v6 = vmul.f32 %v569_v7, %v566_v25  ;;  %v633_v24 = vld [vmem:[#allocation7 + $0x10] sm:$0xff] }
 0x327   : > { %v577_v27 = vadd.f32 %v575_v14, %v571_v26  ;;  %v578_v28 = vadd.f32 %v575_v14, %v572_v6  ;;  %v540_v29 = vpop.permute.xlu1 %539  ;;  %v588_v30 = vpop.permute.xlu0 %587 }
 0x328   : > { %v541_v31 = vsel %vm361_vm3, %v538_v21, %v540_v29  ;;  %v542_v33 = vsel %vm361_vm3, %v540_v29, %v538_v21  ;;  %v589_v38 = vsel %vm411_vm2, %v586_v22, %v588_v30  ;;  %v590_v34 = vsel %vm411_vm2, %v588_v30, %v586_v22 }
 0x329   : > { %v547_v40 = vmul.f32 %v545_v11, %v542_v33  ;;  %v548_v41 = vmul.f32 %v545_v11, %v541_v31  ;;  %v579_v43 = vadd.f32 %v577_v27, %v1629_v3  ;;  %v580_v44 = vadd.f32 %v578_v28, %v1635_v16  ;;  %v714_v27 = vld [vmem:[#allocation7 + $0x18] ss:$0 sm:$0xff] }
 0x32a   : > { %v595_v45 = vmul.f32 %v593_v8, %v590_v34  ;;  %v596_v47 = vmul.f32 %v593_v8, %v589_v38 }
 0x32b   : > { %v553_v32 = vadd.f32 %v551_v12, %v547_v40  ;;  %v554_v48 = vadd.f32 %v551_v12, %v548_v41  ;;  %v612_v49 = vpop.permute.xlu1 %611  ;;  %v610_v50 = vpop.permute.xlu0 %609  ;;  %v581_v60 = vmax.f32 %v579_v43, 0.0  ;;  %v582_v61 = vmax.f32 %v580_v44, 0.0 }
 0x32c   : > { %v601_v51 = vadd.f32 %v599_v10, %v595_v45  ;;  %v602_v52 = vadd.f32 %v599_v10, %v596_v47  ;;  %v613_v42 = vsel %vm436_vm5, %v610_v50, %v612_v49  ;;  %v614_v46 = vsel %vm436_vm5, %v612_v49, %v610_v50 }
 0x32d   : > { %v555_v56 = vadd.f32 %v553_v32, %v1629_v3  ;;  %v556_v57 = vadd.f32 %v554_v48, %v1635_v16  ;;  %v619_v58 = vmul.f32 %v617_v19, %v613_v42  ;;  %v620_v59 = vmul.f32 %v617_v19, %v614_v46 }
 0x32e   : > { %v603_v62 = vadd.f32 %v601_v51, %v1629_v3  ;;  %v604_v63 = vadd.f32 %v602_v52, %v1635_v16  ;;  %v584_v10 = vsel %vm1548_vm4, %v1635_v16, %v582_v61  ;;  %v583_v12 = vsel %vm1557_vm6, %v1629_v3, %v581_v60 }
 0x32f   : > { %v625_v1 = vadd.f32 %v623_v15, %v619_v58  ;;  %v626_v2 = vadd.f32 %v623_v15, %v620_v59  ;;  %v557_v0 = vmax.f32 %v555_v56, 0.0  ;;  %v558_v7 = vmax.f32 %v556_v57, 0.0 }
 0x330   : > { %v605_v18 = vmax.f32 %v603_v62, 0.0  ;;  %v606_v5 = vmax.f32 %v604_v63, 0.0  ;;  %v1272_v41 = vmov 1966171168  }
 0x331   : > { %v627_v37 = vadd.f32 %v625_v1, %v1629_v3  ;;  %v628_v8 = vadd.f32 %v626_v2, %v1635_v16  ;;  %v560_v4 = vsel %vm1599_vm9, %v1635_v16, %v558_v7  ;;  %v559_v9 = vsel %vm1607_vm11, %v1629_v3, %v557_v0 }
 0x332   : > { %v608_v11 = vsel %vm1562_vm7, %v1635_v16, %v606_v5  ;;  %v607_v14 = vsel %vm1567_vm8, %v1629_v3, %v605_v18  ;;  %v805_v43 = vunpack.c.l.s4 %v1272_v41 }
 0x333   : > { %v629_v15 = vmax.f32 %v627_v37, 0.0  ;;  %v630_v19 = vmax.f32 %v628_v8, 0.0  ;;  %v960_v20 = vpack.c.bf16 %v584_v10, %v608_v11  ;;  %v962_v21 = vpack.c.bf16 %v583_v12, %v607_v14 }
 0x334   : > { %v806_v44 = vunpack.c.0.s8 %v805_v43 }
 0x335   : > { %961 = vmatprep.subr.bf16.mxu0 %v960_v20  ;;  %v632_v13 = vsel %vm1603_vm10, %v1635_v16, %v630_v19  ;;  %v631_v17 = vsel %vm1611_vm12, %v1629_v3, %v629_v15 }
 0x336   : > { %963 = vmatpush1.bf16.msra.mxu0 %v962_v21  ;;  %v964_v22 = vpack.c.bf16 %v560_v4, %v632_v13  ;;  %v966_v23 = vpack.c.bf16 %v559_v9, %v631_v17  ;;  %v809_v47 = vsub.s32 %v806_v44, %v1523_v39 }
 0x338   : > { %965 = vmatprep.subr.bf16.mxu0 %v964_v22 }
 0x33a   : > { %967 = vmatpush1.bf16.msra.mxu0 %v966_v23 }
 0x33c   : > { %v636_v53 = vpop.permute.xlu0 %635 }
 0x33d   : > { %943 = vmatmul.mubr.msk.f32.vlgmr.msra.gmra.mrb[2].mxu0 %vm462_vm13, %v633_v24 }
 0x410   : > { %v707_v25 = vpop.f32.mrb[2].mxu0 }
 0x411   : > { %v708_v36 = vadd.f32 %v707_v25, %v636_v53  ;;  %v709_v16 = vpop.f32.mrb[3].mxu0 }
 0x412   : > { %v710_v26 = vadd.f32 %v709_v16, %v636_v53 }
 0x413   : > { %v712_v54 = vmax.f32 %v708_v36, 0.0 }
 0x414   : > { %v713_v6 = vmax.f32 %v710_v26, 0.0 }
 0x416   : > { %718 = vmatprep.subr.mxu1 %v713_v6 }
 0x417   : > { %719 = vmatpush1.msra.mxu1 %v712_v54 }
 0x418   : > { %944 = vmatmul.mubr.msk.f32.vlgmr.msra.gmra.mrb[2].mxu1 %vm280_vm0, %v714_v27 }
 0x4eb   : > { %v784_v55 = vpop.f32.mrb[2].mxu1 }
 0x4ec   : > { %v789_v3 = vsub.f32 0.0, %v784_v55  ;;  %v786_v28 = vpop.f32.mrb[3].mxu1 }
 0x4ed   : > { %v790_v29 = vsub.f32 0.0, %v786_v28 }
 0x4ee   : > { %v791_v30 = vmul.f32 1.442695, %v789_v3 }
 0x4ef   : > { %v793_v31 = vmul.f32 1.442695, %v790_v29 }
 0x4f0   : > { %1079 = vpow2.f32 %v791_v30 }
 0x4f1   : > { %1081 = vpow2.f32 %v793_v31 }
 0x4fa   : > { %v1080_v33 = vpop.eup %1079 }
 0x4fb   : > { %v1082_v38 = vpop.eup %1081  ;;  %v795_v34 = vadd.f32 1.0, %v1080_v33 }
 0x4fc   : > { %v796_v40 = vadd.f32 1.0, %v1082_v38 }
 0x4fd   : > { %1083 = vrcp.f32 %v795_v34 }
 0x4fe   : > { %1085 = vrcp.f32 %v796_v40 }
 0x507   : > { %v1084_v45 = vpop.eup %1083 }
 0x508   : > { %v1086_v32 = vpop.eup %1085 }
 0x509   : > { %v803_v48 = vcombine.low %v1084_v45, %v1086_v32 }
 0x50b   : > { %v810_v49 = vrot.slane %v803_v48, %v809_v47 }
 0x50d   : > { %v817_v50 = vrot.slane %v810_v49, %v809_v47 }
 0x50f   : > { %823 = vst.msk [vmem:[%s211_s22] sm:$0x3] %vm821_vm14, %v817_v50 }
 0x510   : > { %1186 = shalt.err (!%p1183_p7)
}
 0x511   : > { %s1187_s17 = scalar_lea.hbm %s1707_s8, 32  ;;  %s1191_s18 = scalar_lea.hbm %s1754_s3, 64 }
 0x512   : > { %p1188_p10 = scmp.ne.s32.totalorder %s1707_s8, %s1187_s17  ;;  %p1192_p0 = scmp.lt.u32.totalorder %s1707_s8, %s1754_s3 }
 0x513   : > { %p1193_p9 = scmp.lt.u32.totalorder %s1191_s18, %s1187_s17  ;;  %p1195_p2 = scmp.lt.u32.totalorder %s1187_s17, %s1707_s8 }
 0x514   : > { %p1189_p13 = pnand %p1188_p10, %p1413_p6 }
 0x515   : > { %p1194_p11 = por %p1193_p9, %p1192_p0 }
 0x516   : > { %p1190_p5 = pneg %p1189_p13 }
 0x517   : > { %p1196_p1 = por %p1195_p2, %p1194_p11 }
 0x519   : > { %p1197_p4 = pnand %p1196_p1, %p1190_p5 }
 0x51b   : > { %1200 = shalt.err (!%p1197_p4)
}
 0x51c   : > { %978 = dma.vmem_to_hbm [thread:$0]  (%p1413_p6), %s1709_s4, 32, %s1707_s8, %s825_s9  }
 0x51d PF: > { %s851_s21 = sand.u32 1, %s1231_s12   ;;  %p1785_p8 = scmp.ne.s32.totalorder %s1759_s19, 0 }
 0x51e   : > { %p1786_p12 = scmp.ge.s32.totalorder %s1243_s15, 2  ;;  %s852_s23 = scalar_lea.sflag [#allocation4], %s851_s21 }
 0x520   : > { %p992_p3 = pnand %p1786_p12, %p1785_p8 }
 0x522   : > { %1226 = dma.done.wait (!%p992_p3), %s852_s23, 32  }
 0x523   : > { %1228 = vsyncadd (!%p992_p3), %s852_s23, 4294967264  ;;  %p17_p7 = scmp.ge.s32.totalorder %s1350_s26, 4   ;;  %s1787_s12 = smov %s1235_s13 }
 0x524   : > { %s1788_s13 = smov %s1239_s14  ;;  %s1789_s14 = smov %s1409_s25 }
 0x525   : > { %s1790_s15 = smov %s1350_s26  ;;  %19 = sbr.rel (!%p17_p7) target bundleno = 6 (0x6), region = 88 }
 0x52c   :  { %857 = vsyncpa [#allocation3], 1 }
 0x52d   :  { %859 = vsyncpa [#allocation3 + $0x1], 1 }
 0x52e   :  { %860 = vsyncpa [#allocation6], 1 }
 0x52f   :  { %861 = vsyncpa [#allocation4], 1 }
 0x530   :  { %863 = vsyncpa [#allocation4 + $0x1], 1 }

</bundles_post_ra>
